<compile_context>
chip_gen: v7x
topology: tpu7x:2x2x1
jax: 0.10.0
libtpu: 0.0.40
codegen_flags: <defaults>
</compile_context>

<pallas_src>
import jax
import jax.numpy as jnp
from jax.experimental import pallas as pl
from jax.experimental.pallas import tpu as pltpu


def _round_up(x, m):
    return ((x + m - 1) // m) * m


def _gather_kernel(ids_ref, table_hbm, out_ref, rows_vmem, sem):
    """Gather embedding-table rows for one tile of token ids.

    ids_ref:   (Np,)  int32, SMEM (scalar-prefetched flattened token ids)
    table_hbm: (V, D) weight table, left in HBM (memory_space=pl.ANY)
    out_ref:   (T, D) output tile (VMEM, auto-pipelined)
    rows_vmem: (T, D) VMEM scratch — DMA landing buffer for the gathered rows
    sem:       DMA semaphore shared by all row copies of this tile
    """
    T = out_ref.shape[0]
    base = pl.program_id(0) * T

    # Issue all row-gather DMAs for this tile (data-dependent HBM source row).
    @pl.loop(0, T)
    def _issue(t):
        row = ids_ref[base + t]
        pltpu.make_async_copy(table_hbm.at[row], rows_vmem.at[t], sem).start()

    # Drain: each wait decrements the semaphore by one row-copy's worth; all
    # copies have identical shape so T waits == T completions.
    @pl.loop(0, T)
    def _drain(t):
        pltpu.make_async_copy(table_hbm.at[0], rows_vmem.at[0], sem).wait()

    out_ref[...] = rows_vmem[...]


def delta_embedding_forward(x, table, *, tile_tokens=256):
    """Pallas equivalent of delta_Embedding.forward.

    x:     integer array of arbitrary shape (e.g. (B, S)); ids must lie in [0, V)
           (torch.nn.Embedding would raise on out-of-range ids; here the gather
           DMA has no runtime bounds check).
    table: (n_embeddings, len_embedding) weight matrix
    returns: x.shape + (len_embedding,) array with table's dtype
    """
    V, D = table.shape
    orig_shape = x.shape
    idx_flat = x.reshape(-1).astype(jnp.int32)
    N = idx_flat.shape[0]

    # Token tile: large to amortize per-step overhead, multiple of 8 (sublane),
    # clamped to the (8-rounded) token count for tiny inputs.
    T = min(_round_up(tile_tokens, 8), _round_up(N, 8))
    Np = _round_up(N, T)
    pad = Np - N
    if pad:
        # Padded ids are 0 -> always a valid in-range row; sliced off below.
        idx_flat = jnp.pad(idx_flat, (0, pad))

    grid = (Np // T,)
    out = pl.pallas_call(
        _gather_kernel,
        out_shape=jax.ShapeDtypeStruct((Np, D), table.dtype),
        grid_spec=pltpu.PrefetchScalarGridSpec(
            num_scalar_prefetch=1,                        # ids -> SMEM
            grid=grid,
            in_specs=[
                pl.BlockSpec(memory_space=pl.ANY),        # table stays in HBM
            ],
            out_specs=pl.BlockSpec((T, D), lambda i, ids: (i, 0)),
            scratch_shapes=[
                pltpu.VMEM((T, D), table.dtype),          # gather landing buffer
                pltpu.SemaphoreType.DMA(()),
            ],
        ),
        compiler_params=pltpu.CompilerParams(
            dimension_semantics=("parallel",),
        ),
    )(idx_flat, table)

    out = out[:N]
    return out.reshape(orig_shape + (D,))


def init_delta_embedding_weights(key, n_embeddings, len_embedding, init_uniform):
    # Matches torch: weights.uniform_(-init_uniform, init_uniform)
    return jax.random.uniform(
        key,
        (n_embeddings, len_embedding),
        dtype=jnp.float32,
        minval=-init_uniform,
        maxval=init_uniform,
    )


if __name__ == "__main__":
    key = jax.random.PRNGKey(0)
    k_w, k_x = jax.random.split(key)

    n_embeddings = 16
    len_embedding = 32
    init_uniform = 0.1
    B, S = 2, 8

    table = init_delta_embedding_weights(k_w, n_embeddings, len_embedding, init_uniform)
    x = jax.random.randint(k_x, (B, S), 0, n_embeddings, dtype=jnp.int32)

    out = delta_embedding_forward(x, table)
    out = jax.block_until_ready(out)

    # Reference check (plain JAX gather == torch.nn.Embedding semantics).
    ref = jnp.take(table, x, axis=0)
    assert out.shape == (B, S, len_embedding)
    assert jnp.allclose(out, ref, atol=1e-6), "mismatch vs reference gather"

    print("KERNEL_OK")
</pallas_src>

<mosaic_0001>
module attributes {stable_mosaic.version = 11 : i64} {
  func.func @_gather_kernel(%arg0: i32, %arg1: memref<16xi32, #tpu.memory_space<smem>>, %arg2: memref<16x32xf32, #tpu.memory_space<any>>, %arg3: memref<16x32xf32, #tpu.memory_space<vmem>>, %arg4: memref<16x32xf32, #tpu.memory_space<vmem>>, %arg5: memref<!tpu.dma_semaphore, #tpu.memory_space<semaphore_mem>>) attributes {dimension_semantics = [#tpu.dimension_semantics<parallel>], iteration_bounds = array<i64: 1>, scalar_prefetch = 1 : i64, scratch_operands = 2 : i64, tpu.core_type = #tpu.core_type<tc>, window_params = [{}, {transform_indices = @transform_1, window_bounds = array<i64: 16, 32>}]} {
    %c16_i32 = arith.constant 16 : i32
    %0 = arith.muli %arg0, %c16_i32 : i32
    %c0_i32 = arith.constant 0 : i32
    %c16_i32_0 = arith.constant 16 : i32
    %1 = arith.addi %c0_i32, %c16_i32_0 : i32
    %c1_i32 = arith.constant 1 : i32
    scf.for %arg6 = %c0_i32 to %1 step %c1_i32  : i32 {
      %c1_i32_8 = arith.constant 1 : i32
      %5 = arith.muli %arg6, %c1_i32_8 : i32
      %c0_i32_9 = arith.constant 0 : i32
      %6 = arith.addi %c0_i32_9, %5 : i32
      %7 = arith.addi %0, %6 : i32
      %8 = arith.index_cast %7 : i32 to index
      %9 = memref.load %arg1[%8] : memref<16xi32, #tpu.memory_space<smem>>
      %c0_i32_10 = arith.constant 0 : i32
      %10 = tpu.memref_slice %arg2[%9, %c0_i32_10] : memref<16x32xf32, #tpu.memory_space<any>> -> memref<1x32xf32, #tpu.memory_space<any>>
      %11 = tpu.memref_squeeze %10 : memref<1x32xf32, #tpu.memory_space<any>> -> memref<32xf32, #tpu.memory_space<any>>
      %c0_i32_11 = arith.constant 0 : i32
      %12 = tpu.memref_slice %arg4[%6, %c0_i32_11] : memref<16x32xf32, #tpu.memory_space<vmem>> -> memref<1x32xf32, #tpu.memory_space<vmem>>
      %13 = tpu.memref_squeeze %12 : memref<1x32xf32, #tpu.memory_space<vmem>> -> memref<32xf32, #tpu.memory_space<vmem>>
      tpu.enqueue_dma source(%11 : memref<32xf32, #tpu.memory_space<any>>) target(%13 : memref<32xf32, #tpu.memory_space<vmem>>) target_semaphore(%arg5 : memref<!tpu.dma_semaphore, #tpu.memory_space<semaphore_mem>>)
    }
    %c16_i32_1 = arith.constant 16 : i32
    %c0_i32_2 = arith.constant 0 : i32
    %c16_i32_3 = arith.constant 16 : i32
    %2 = arith.addi %c0_i32_2, %c16_i32_3 : i32
    %c1_i32_4 = arith.constant 1 : i32
    scf.for %arg6 = %c0_i32_2 to %2 step %c1_i32_4  : i32 {
      %c0_i32_8 = arith.constant 0 : i32
      %c0_i32_9 = arith.constant 0 : i32
      %c0_i32_10 = arith.constant 0 : i32
      %5 = tpu.memref_slice %arg2[%c0_i32_8, %c0_i32_10] : memref<16x32xf32, #tpu.memory_space<any>> -> memref<1x32xf32, #tpu.memory_space<any>>
      %6 = tpu.memref_squeeze %5 : memref<1x32xf32, #tpu.memory_space<any>> -> memref<32xf32, #tpu.memory_space<any>>
      %c0_i32_11 = arith.constant 0 : i32
      %7 = tpu.memref_slice %arg4[%c0_i32_9, %c0_i32_11] : memref<16x32xf32, #tpu.memory_space<vmem>> -> memref<1x32xf32, #tpu.memory_space<vmem>>
      %8 = tpu.memref_squeeze %7 : memref<1x32xf32, #tpu.memory_space<vmem>> -> memref<32xf32, #tpu.memory_space<vmem>>
      tpu.wait_dma2 semaphore(%arg5 : memref<!tpu.dma_semaphore, #tpu.memory_space<semaphore_mem>>) src(%6 : memref<32xf32, #tpu.memory_space<any>>) dst(%8 : memref<32xf32, #tpu.memory_space<vmem>>)
    }
    %c0 = arith.constant 0 : index
    %c0_5 = arith.constant 0 : index
    %3 = vector.load %arg4[%c0, %c0_5] : memref<16x32xf32, #tpu.memory_space<vmem>>, vector<16x32xf32>
    %c0_6 = arith.constant 0 : index
    %c0_7 = arith.constant 0 : index
    %4 = vector.load %arg3[%c0_6, %c0_7] : memref<16x32xf32, #tpu.memory_space<vmem>>, vector<16x32xf32>
    tpu.vector_store %arg3[%c0_6, %c0_7], %3 {strides = array<i32>} : memref<16x32xf32, #tpu.memory_space<vmem>>, vector<16x32xf32>,
    return
  }
  func.func @transform_1(%arg0: i32, %arg1: memref<16xi32, #tpu.memory_space<smem>>) -> (i32, i32) {
    %c0_i32 = arith.constant 0 : i32
    %c0_i32_0 = arith.constant 0 : i32
    return %arg0, %c0_i32 : i32, i32
  }
}

</mosaic_0001>

<bundles_post_ra>
// kernel: tpu_custom_call.1
= control target key start
LH: loop header
LB: loop body
LE: loop exit
PB: predicated region body
PF: predicated region fallthrough
CT: control target
= control target key end

     0   :  { %s246_s0 = inlined_call_operand.hbm [shape: s32[16], index: 0, kind: input, shape index: {}]   ;;  %s247_s1 = inlined_call_operand.hbm [shape: f32[16,32], index: 1, kind: input, shape index: {}]   ;;  %s248_s2 = inlined_call_operand.hbm [shape: f32[16,32], index: 2, kind: output, shape index: {}]  }
   0x1   :  { %s105_s11 = scalar_lea.hbm %s246_s0, 16 }
   0x2   :  { %p106_p0 = scmp.ne.s32.totalorder %s246_s0, %s105_s11  ;;  %p109_p1 = scmp.lt.u32.totalorder %s105_s11, %s246_s0 }
   0x4   :  { %p111_p2 = pnand %p109_p1, %p106_p0 }
   0x6   :  { %114 = shalt.err (!%p111_p2)  }
   0x7   :  { %s183_s16 = smov [#allocation5]  }
   0x8   :  { %8 = dma.hbm_to_smem %s246_s0, 16, %s183_s16, [#allocation4] }
   0x9   :  { %169 = dma.done.wait [#allocation4], 16 }
   0xa   :  { %170 = vsyncadd [#allocation4], 4294967280 }
   0xb   :  { %10 = sfence }
   0xc   :  { %11 = vsyncpa [#allocation7], 0  ;;  %s215_s19 = smov 0  }
   0xd LB: > { %s20_s20 = sld [smem:[#allocation5 + %s177_s19]]  ;;  %s23_s21 = scalar_lea.vmem [#allocation2], %s177_s19  ;;  %s177_s19 = sphi %s215_s19, %s18_s19  }
   0xe   : > { %s31_s22 = sshll.u32 %s23_s21, 4  ;;  %s117_s29 = scalar_lea.hbm %s247_s1, 256  ;;  %s32_s22 = int_to_ptr.vmem [resolvable:$true] %s31_s22 }
  0x13   : > { %s83_s23 = sshll.u32 %s20_s20, 4 }
  0x14   : > { %s22_s25 = scalar_lea.hbm %s247_s1, %s83_s23 }
  0x15   : > { %s115_s26 = scalar_lea.hbm %s22_s25, 16  ;;  %p118_p4 = scmp.lt.u32.totalorder %s22_s25, %s247_s1 }
  0x16   : > { %p116_p3 = scmp.ne.s32.totalorder %s22_s25, %s115_s26  ;;  %p119_p5 = scmp.lt.u32.totalorder %s117_s29, %s115_s26 }
  0x17   : > { %p121_p7 = scmp.lt.u32.totalorder %s115_s26, %s22_s25 }
  0x18   : > { %p120_p6 = por %p119_p5, %p118_p4 }
  0x1a   : > { %p122_p8 = por %p121_p7, %p120_p6 }
  0x1c   : > { %p123_p9 = pnand %p122_p8, %p116_p3 }
  0x1e   : > { %126 = shalt.err (!%p123_p9)  }
  0x1f   : > { %s127_s4 = scalar_lea.vmem %s32_s22, 16  ;;  %s184_s5 = smov [#allocation2]  }
  0x20   : > { %p128_p10 = scmp.ne.s32.totalorder %s32_s22, %s127_s4  ;;  %s129_s6 = sshll.u32 %s184_s5, 4  ;;  %s130_s6 = int_to_ptr.vmem [resolvable:$false] %s129_s6 }
  0x21   : > { %s131_s7 = scalar_lea.vmem %s130_s6, 256  ;;  %p132_p11 = scmp.lt.s32.totalorder %s32_s22, %s130_s6 }
  0x22   : > { %p133_p12 = scmp.lt.s32.totalorder %s131_s7, %s127_s4 }
  0x24   : > { %p134_p13 = por %p133_p12, %p132_p11 }
  0x26   : > { %p135_p0 = pnand %p134_p13, %p128_p10 }
  0x28   : > { %138 = shalt.err (!%p135_p0)  }
  0x29   : > { %34 = dma.hbm_to_vmem [thread:$0]  %s22_s25, 16, %s32_s22, [#allocation3] }
  0x2a   : > { %s18_s19 = sadd.s32 1, %s177_s19  }
  0x2b   : > { %p15_p1 = scmp.ge.s32.totalorder %s18_s19, 16  }
  0x2c   :  { %s179_s8 = smov (%p15_p1), 0  }
  0x2d   :  { %17 = sbr.rel (!%p15_p1) target bundleno = 13 (0xd), region = 40 }
  0x34 LB: > { %171 = dma.done.wait [#allocation3], 16  ;;  %s181_s8 = sphi %s179_s8, %s40_s8  }
  0x35   : > { %172 = vsyncadd [#allocation3], 4294967280  ;;  %s40_s8 = sadd.s32 1, %s181_s8  }
  0x36   : > { %p37_p2 = scmp.ge.s32.totalorder %s40_s8, 16  }
  0x37   :  { %v43_v0 = vld [vmem:[#allocation2] sm:$0xff] (%p37_p2)  ;;  %vm45_vm0 = vcmask (%p37_p2), 261120   ;;  %v44_v1 = vld [vmem:[#allocation2 + $0x8] sm:$0xff] (%p37_p2)  ;;  %s185_s9 = smov (%p37_p2), [#allocation6]  }
  0x38   :  { %39 = sbr.rel (!%p37_p2) target bundleno = 52 (0x34), region = 51  ;;  %46 = vst.msk [vmem:[#allocation6] sm:$0xff] (%p37_p2), %vm45_vm0, %v43_v0  ;;  %47 = vst.msk [vmem:[#allocation6 + $0x8] sm:$0xff] (%p37_p2), %vm45_vm0, %v44_v1  ;;  %s53_s10 = sshll.u32 (%p37_p2), %s185_s9, 4  ;;  %s54_s10 = int_to_ptr.vmem [resolvable:$true] %s53_s10 }
  0x39   :  { %s139_s11 = scalar_lea.vmem (%p37_p2), %s54_s10, 256  ;;  %p144_p4 = scmp.lt.s32.totalorder (%p37_p2), %s54_s10, %s54_s10 }
  0x3a   :  { %p140_p3 = scmp.ne.s32.totalorder (%p37_p2), %s54_s10, %s139_s11  ;;  %p145_p5 = scmp.lt.s32.totalorder (%p37_p2), %s139_s11, %s139_s11 }
  0x3c   :  { %p146_p6 = por (%p37_p2), %p145_p5, %p144_p4 }
  0x3e   :  { %p147_p7 = pnand (%p37_p2), %p146_p6, %p140_p3 }
  0x40   :  { %150 = shalt.err (!%p147_p7)
}
  0x41   :  { %s151_s13 = scalar_lea.hbm %s248_s2, 256 }
  0x42   :  { %p152_p8 = scmp.ne.s32.totalorder %s248_s2, %s151_s13  ;;  %p155_p9 = scmp.lt.u32.totalorder %s151_s13, %s248_s2 }
  0x44   :  { %p157_p10 = pnand %p155_p9, %p152_p8 }
  0x46   :  { %160 = shalt.err (!%p157_p10)
}
  0x47   :  { %s186_s18 = smov 128   ;;  %s187_s19 = smov 8  }
  0x48   :  { %59 = dma.vmem_to_hbm [thread:$0]  %s54_s10, 256, %s248_s2, [#allocation7], %s186_s18, %s186_s18, %s187_s19  }
  0x49   :  { %173 = dma.done.wait [#allocation7], 256  }
  0x4a   :  { %174 = vsyncadd [#allocation7], 4294967040 }
  0x4b   :  { %63 = vsyncpa [#allocation7], 1 }
  0x4c   :  { %64 = vsyncmov [#allocation3] }
  0x4f   :  { %s65_s22 = vpop.sfrf %64 }
  0x50   :  { %p84_p11 = scmp.ne.s32.totalorder %s65_s22, 0 }
  0x52   :  { %69 = shalt.err (%p84_p11)  }

</bundles_post_ra>
